<compile_context>
chip_gen: v7x
topology: tpu7x:2x2x1
jax: 0.10.0
libtpu: 0.0.40
codegen_flags: <defaults>
</compile_context>

<pallas_src>
import numpy as np
import jax
import jax.numpy as jnp
from jax.experimental import pallas as pl
from jax.experimental.pallas import tpu as pltpu

# ------------------------- synthetic Mel config (small) -------------------------
N_FFT = 64
HOP = 16
WIN = 64
N_MELS = 8
N_FREQ = N_FFT // 2 + 1            # 33
N_FREQ_PAD = 128                   # lane-tile aligned re|im split (feedback #4)
SR = 4000.0
F_MIN = 0.0
F_MAX = SR / 2.0
PAD_VALUE = float(np.log(1e-5))    # MelSpectrogram().config.pad_value
FM_COEF = 2.0
MEL_COEF = 45.0
R = N_FFT // HOP                   # hop-chunks per frame (4)
MXU_DTYPE = jnp.bfloat16           # DFT matmul operand dtype (f32 accumulation)
# TODO(synk): validate bf16 DFT operands against an f32 torch.stft reference; keep the
# basis f32 on v6e/v7x if the mel-L1 drift (amplified by MEL_COEF=45) matters.


# ------------------------- deterministic "parameters" ---------------------------
def _hz_to_mel(f):
    return 2595.0 * np.log10(1.0 + f / 700.0)


def _mel_to_hz(m):
    return 700.0 * (10.0 ** (m / 2595.0) - 1.0)


def _make_mel_fb(n_freq, n_mels, sr, fmin, fmax):
    mels = np.linspace(_hz_to_mel(fmin), _hz_to_mel(fmax), n_mels + 2)
    hz = _mel_to_hz(mels)
    bins = np.linspace(0.0, sr / 2.0, n_freq)
    fb = np.zeros((n_freq, n_mels), dtype=np.float32)
    for m in range(n_mels):
        left, center, right = hz[m], hz[m + 1], hz[m + 2]
        up = (bins - left) / max(center - left, 1e-8)
        down = (right - bins) / max(right - center, 1e-8)
        fb[:, m] = np.maximum(0.0, np.minimum(up, down))
    return fb


_n = np.arange(N_FFT)[:, None].astype(np.float64)
_k = np.arange(N_FREQ)[None, :].astype(np.float64)
_cos = np.cos(2.0 * np.pi * _n * _k / N_FFT)                    # (n_fft, n_freq)
_sin = -np.sin(2.0 * np.pi * _n * _k / N_FFT)                   # (n_fft, n_freq)
_hann = 0.5 - 0.5 * np.cos(2.0 * np.pi * np.arange(WIN) / WIN)  # (n_fft,)

# Fused, window-folded real-DFT basis: columns [cos | 0pad | sin | 0pad];
# re/im boundary at N_FREQ_PAD=128 so the split is a free lane-aligned slice.
_basis = np.zeros((N_FFT, 2 * N_FREQ_PAD), dtype=np.float64)
_basis[:, :N_FREQ] = _cos
_basis[:, N_FREQ_PAD:N_FREQ_PAD + N_FREQ] = _sin
WB_BASIS = (_hann[:, None] * _basis).astype(np.float32)         # (n_fft, 2*n_freq_pad)

MEL_FB_PAD = np.zeros((N_FREQ_PAD, N_MELS), dtype=np.float32)
MEL_FB_PAD[:N_FREQ, :] = _make_mel_fb(N_FREQ, N_MELS, SR, F_MIN, F_MAX)


# ------------------------------ fused Pallas kernel ------------------------------
def _make_loss_kernel(n_frames):
    """One grid step == one batch element + one shard of the adv/fm reduction rows."""

    def kernel(chunks_ref, wb_ref, fb_ref, tgt_ref,
               adv_x_ref, adv_w_ref, fm_g_ref, fm_r_ref, fm_w_ref,
               adv_o, fm_o, mel_o, frames_ref):
        # --- adversarial shard: sum_t mean((p_t - 1)^2), per-row 1/numel weights ----
        d = adv_x_ref[0] - 1.0                                   # (adv_rows, 128)
        adv_o[...] = jnp.reshape(jnp.sum(adv_w_ref[0] * d * d), (1, 1, 1))

        # --- feature-matching shard: sum_t mean(|gen_t - real_t|) -------------------
        fm_o[...] = jnp.reshape(
            jnp.sum(fm_w_ref[0] * jnp.abs(fm_g_ref[0] - fm_r_ref[0])), (1, 1, 1))

        # --- log-mel spectrogram + L1 vs target, fully in VMEM ----------------------
        # Assemble the (n_frames, n_fft) frame tile once in scratch (feedback #1):
        # frames[f, r*HOP:(r+1)*HOP] == hop-chunk (f + r).
        cb = chunks_ref[0]                                       # (n_chunks, hop) bf16
        for r in range(R):
            frames_ref[:, r * HOP:(r + 1) * HOP] = cb[r:r + n_frames, :]

        # Single K=n_fft MXU matmul against the fused windowed [cos|sin] basis.
        rim = jnp.dot(frames_ref[...], wb_ref[...],
                      preferred_element_type=jnp.float32)        # (n_frames, 2*NFP)
        re = rim[:, :N_FREQ_PAD]                                 # lane-aligned slices
        im = rim[:, N_FREQ_PAD:]
        mag = jnp.sqrt(re * re + im * im)                        # f32, no extra eps
        mel = jnp.dot(mag, fb_ref[...], preferred_element_type=jnp.float32)
        logmel = jnp.log(jnp.maximum(mel, 1e-5))                 # (n_frames, n_mels)
        mel_o[...] = jnp.reshape(jnp.sum(jnp.abs(logmel - tgt_ref[0])), (1, 1, 1))

    return kernel


# ------------------------------ packing helpers -----------------------------------
def _pack_tensors(tensors, pad_val):
    """Per-tensor padding to a 128 boundary (feedback #3): every packed row belongs
    to exactly one tensor, so the mean weight is a per-row (rows, 1) array."""
    row_blocks, w_blocks = [], []
    for t in tensors:
        flat = jnp.asarray(t, jnp.float32).reshape(-1)
        n = int(flat.shape[0])
        rows = -(-n // 128)
        extra = rows * 128 - n
        if extra:
            flat = jnp.concatenate([flat, jnp.full((extra,), pad_val, jnp.float32)])
        row_blocks.append(flat.reshape(rows, 128))
        w_blocks.append(np.full((rows, 1), 1.0 / float(n), np.float32))
    x = jnp.concatenate(row_blocks, axis=0)
    w = jnp.asarray(np.concatenate(w_blocks, axis=0))
    return x, w


def _shard_rows(x, shards, pad_val):
    """Pad rows to a multiple of `shards` and reshape to (shards, rows_per, cols)
    so each grid step reduces its own slice of the packed rows."""
    rows, cols = int(x.shape[0]), int(x.shape[1])
    rows_pad = -(-rows // shards) * shards
    if rows_pad != rows:
        x = jnp.concatenate(
            [x, jnp.full((rows_pad - rows, cols), pad_val, x.dtype)], axis=0)
    return x.reshape(shards, rows_pad // shards, cols)


# ------------------------------ generator loss -------------------------------------
def generator_loss(spectrogram, generated_audio, p_gen_outs, p_real_feat, p_gen_feat,
                   s_gen_outs, s_real_feat, s_gen_feat):
    audio = jnp.squeeze(generated_audio, axis=1)                 # (B, T)
    batch, T = audio.shape
    assert T % HOP == 0, "audio length must be a multiple of the hop size"

    pad = (N_FFT - HOP) // 2
    padded = jnp.pad(audio, ((0, 0), (pad, pad)), mode="reflect")  # (B, T + n_fft - hop)
    t_pad = T + N_FFT - HOP
    n_chunks = t_pad // HOP
    n_frames = (t_pad - N_FFT) // HOP + 1                        # == T // hop
    # bf16 in the wrapper (feedback #2): halves the audio HBM->VMEM bytes.
    chunks = padded.reshape(batch, n_chunks, HOP).astype(MXU_DTYPE)

    # pad target spectrogram on the frame axis with the mel pad value if shorter
    spec = spectrogram.astype(jnp.float32)
    if spec.shape[-1] < n_frames:
        diff = n_frames - spec.shape[-1]
        spec = jnp.concatenate(
            [spec, jnp.full((spec.shape[0], spec.shape[1], diff), PAD_VALUE, jnp.float32)],
            axis=-1)
    target_t = jnp.transpose(spec, (0, 2, 1))                    # (B, n_frames, n_mels)

    # packed, per-tensor-padded reduction inputs (pad values contribute exactly 0)
    adv_x, adv_w = _pack_tensors(list(p_gen_outs) + list(s_gen_outs), pad_val=1.0)
    fm_g, fm_w = _pack_tensors(list(p_gen_feat) + list(s_gen_feat), pad_val=0.0)
    fm_r, _ = _pack_tensors(list(p_real_feat) + list(s_real_feat), pad_val=0.0)

    adv_x = _shard_rows(adv_x, batch, 1.0)                       # (B, adv_rows, 128)
    adv_w = _shard_rows(adv_w, batch, 0.0)                       # (B, adv_rows, 1)
    fm_g = _shard_rows(fm_g, batch, 0.0)                         # (B, fm_rows, 128)
    fm_r = _shard_rows(fm_r, batch, 0.0)
    fm_w = _shard_rows(fm_w, batch, 0.0)                         # (B, fm_rows, 1)
    adv_rows = int(adv_x.shape[1])
    fm_rows = int(fm_g.shape[1])

    wb = jnp.asarray(WB_BASIS, dtype=MXU_DTYPE)                  # (64, 256) bf16
    fb = jnp.asarray(MEL_FB_PAD)                                 # (128, 8) f32

    kernel = _make_loss_kernel(n_frames)
    grid_spec = pltpu.PrefetchScalarGridSpec(
        num_scalar_prefetch=0,
        grid=(batch,),
        in_specs=[
            pl.BlockSpec((1, n_chunks, HOP), lambda b: (b, 0, 0)),        # chunks
            pl.BlockSpec((N_FFT, 2 * N_FREQ_PAD), lambda b: (0, 0)),      # DFT basis
            pl.BlockSpec((N_FREQ_PAD, N_MELS), lambda b: (0, 0)),         # mel fb
            pl.BlockSpec((1, n_frames, N_MELS), lambda b: (b, 0, 0)),     # target
            pl.BlockSpec((1, adv_rows, 128), lambda b: (b, 0, 0)),        # adv values
            pl.BlockSpec((1, adv_rows, 1), lambda b: (b, 0, 0)),          # adv row wts
            pl.BlockSpec((1, fm_rows, 128), lambda b: (b, 0, 0)),         # fm gen
            pl.BlockSpec((1, fm_rows, 128), lambda b: (b, 0, 0)),         # fm real
            pl.BlockSpec((1, fm_rows, 1), lambda b: (b, 0, 0)),           # fm row wts
        ],
        out_specs=[
            pl.BlockSpec((1, 1, 1), lambda b: (b, 0, 0)),
            pl.BlockSpec((1, 1, 1), lambda b: (b, 0, 0)),
            pl.BlockSpec((1, 1, 1), lambda b: (b, 0, 0)),
        ],
        scratch_shapes=[pltpu.VMEM((n_frames, N_FFT), MXU_DTYPE)],        # frame tile
    )

    adv_s, fm_s, mel_s = pl.pallas_call(
        kernel,
        out_shape=(jax.ShapeDtypeStruct((batch, 1, 1), jnp.float32),
                   jax.ShapeDtypeStruct((batch, 1, 1), jnp.float32),
                   jax.ShapeDtypeStruct((batch, 1, 1), jnp.float32)),
        grid_spec=grid_spec,
        compiler_params=pltpu.CompilerParams(
            dimension_semantics=("parallel",),                   # dual-TC on v7x
            vmem_limit_bytes=32 * 1024 * 1024),
    )(chunks, wb, fb, target_t, adv_x, adv_w, fm_g, fm_r, fm_w)

    adv_loss = jnp.sum(adv_s)
    fm_loss = jnp.sum(fm_s)
    mel_loss = jnp.sum(mel_s) / float(batch * N_MELS * n_frames)
    G_loss = adv_loss + FM_COEF * fm_loss + MEL_COEF * mel_loss
    return G_loss, adv_loss, fm_loss, mel_loss


# ------------------------------------ main ---------------------------------------
if __name__ == "__main__":
    key = jax.random.PRNGKey(0)
    keys = jax.random.split(key, 16)

    B, T = 2, 256
    F = T // HOP                                    # 16 mel frames

    generated_audio = 0.1 * jax.random.normal(keys[0], (B, 1, T), jnp.float32)
    # input spectrogram is 2 frames shorter -> exercises the pad_value path
    spectrogram = jax.random.normal(keys[1], (B, N_MELS, F - 2), jnp.float32)

    p_gen_outs = [jax.random.normal(keys[2], (B, 1, 24), jnp.float32),
                  jax.random.normal(keys[3], (B, 1, 12), jnp.float32)]
    p_real_feat = [jax.random.normal(keys[4], (B, 4, 32), jnp.float32),
                   jax.random.normal(keys[5], (B, 8, 16), jnp.float32)]
    p_gen_feat = [jax.random.normal(keys[6], (B, 4, 32), jnp.float32),
                  jax.random.normal(keys[7], (B, 8, 16), jnp.float32)]

    s_gen_outs = [jax.random.normal(keys[8], (B, 1, 20), jnp.float32)]
    s_real_feat = [jax.random.normal(keys[9], (B, 4, 24), jnp.float32),
                   jax.random.normal(keys[10], (B, 8, 12), jnp.float32)]
    s_gen_feat = [jax.random.normal(keys[11], (B, 4, 24), jnp.float32),
                  jax.random.normal(keys[12], (B, 8, 12), jnp.float32)]

    outs = generator_loss(spectrogram, generated_audio, p_gen_outs, p_real_feat,
                          p_gen_feat, s_gen_outs, s_real_feat, s_gen_feat)
    outs = jax.block_until_ready(outs)

    assert all(bool(jnp.isfinite(o)) for o in outs), "non-finite loss"
    print("KERNEL_OK")
</pallas_src>

<mosaic_0001>
module attributes {stable_mosaic.version = 11 : i64} {
  func.func @kernel(%arg0: i32, %arg1: memref<1x19x16xbf16, #tpu.memory_space<vmem>>, %arg2: memref<64x256xbf16, #tpu.memory_space<vmem>>, %arg3: memref<128x8xf32, #tpu.memory_space<vmem>>, %arg4: memref<1x16x8xf32, #tpu.memory_space<vmem>>, %arg5: memref<1x2x128xf32, #tpu.memory_space<vmem>>, %arg6: memref<1x2x1xf32, #tpu.memory_space<vmem>>, %arg7: memref<1x4x128xf32, #tpu.memory_space<vmem>>, %arg8: memref<1x4x128xf32, #tpu.memory_space<vmem>>, %arg9: memref<1x4x1xf32, #tpu.memory_space<vmem>>, %arg10: memref<1x1x1xf32, #tpu.memory_space<vmem>>, %arg11: memref<1x1x1xf32, #tpu.memory_space<vmem>>, %arg12: memref<1x1x1xf32, #tpu.memory_space<vmem>>, %arg13: memref<16x64xbf16, #tpu.memory_space<vmem>>) attributes {dimension_semantics = [#tpu.dimension_semantics<parallel>], iteration_bounds = array<i64: 2>, scalar_prefetch = 0 : i64, scratch_operands = 1 : i64, tpu.core_type = #tpu.core_type<tc>, window_params = [{transform_indices = @transform_0, window_bounds = array<i64: 1, 19, 16>}, {pipeline_mode = #tpu.pipeline_mode<synchronous>, transform_indices = @transform_1, window_bounds = array<i64: 64, 256>}, {pipeline_mode = #tpu.pipeline_mode<synchronous>, transform_indices = @transform_2, window_bounds = array<i64: 128, 8>}, {transform_indices = @transform_3, window_bounds = array<i64: 1, 16, 8>}, {transform_indices = @transform_4, window_bounds = array<i64: 1, 2, 128>}, {transform_indices = @transform_5, window_bounds = array<i64: 1, 2, 1>}, {transform_indices = @transform_6, window_bounds = array<i64: 1, 4, 128>}, {transform_indices = @transform_7, window_bounds = array<i64: 1, 4, 128>}, {transform_indices = @transform_8, window_bounds = array<i64: 1, 4, 1>}, {transform_indices = @transform_9, window_bounds = array<i64: 1, 1, 1>}, {transform_indices = @transform_10, window_bounds = array<i64: 1, 1, 1>}, {transform_indices = @transform_11, window_bounds = array<i64: 1, 1, 1>}]} {
    %c0 = arith.constant 0 : index
    %c0_0 = arith.constant 0 : index
    %c0_1 = arith.constant 0 : index
    %0 = vector.load %arg5[%c0, %c0_0, %c0_1] : memref<1x2x128xf32, #tpu.memory_space<vmem>>, vector<1x2x128xf32>
    %1 = vector.shape_cast %0 : vector<1x2x128xf32> to vector<2x128xf32>
    %cst = arith.constant 1.000000e+00 : f32
    %2 = vector.broadcast %cst : f32 to vector<2x128xf32>
    %3 = arith.subf %1, %2 : vector<2x128xf32>
    %c0_2 = arith.constant 0 : index
    %c0_3 = arith.constant 0 : index
    %c0_4 = arith.constant 0 : index
    %4 = vector.load %arg6[%c0_2, %c0_3, %c0_4] : memref<1x2x1xf32, #tpu.memory_space<vmem>>, vector<1x2x1xf32>
    %5 = vector.shape_cast %4 : vector<1x2x1xf32> to vector<2x1xf32>
    %6 = vector.broadcast %5 : vector<2x1xf32> to vector<2x128xf32>
    %7 = arith.mulf %6, %3 : vector<2x128xf32>
    %8 = arith.mulf %7, %3 : vector<2x128xf32>
    %9 = vector.shape_cast %8 : vector<2x128xf32> to vector<1x2x128xf32>
    %cst_5 = arith.constant dense<0.000000e+00> : vector<1xf32>
    %10 = vector.multi_reduction <add>, %9, %cst_5 [1, 2] : vector<1x2x128xf32> to vector<1xf32>
    %11 = vector.shape_cast %10 : vector<1xf32> to vector<1x1x1xf32>
    %12 = vector.extract %11[0, 0, 0] : f32 from vector<1x1x1xf32>
    %13 = vector.broadcast %12 : f32 to vector<1x1x1xf32>
    %c0_6 = arith.constant 0 : index
    %c0_7 = arith.constant 0 : index
    %c0_8 = arith.constant 0 : index
    %14 = vector.load %arg10[%c0_6, %c0_7, %c0_8] : memref<1x1x1xf32, #tpu.memory_space<vmem>>, vector<1x1x1xf32>
    tpu.vector_store %arg10[%c0_6, %c0_7, %c0_8], %13 {strides = array<i32>} : memref<1x1x1xf32, #tpu.memory_space<vmem>>, vector<1x1x1xf32>,
    %c0_9 = arith.constant 0 : index
    %c0_10 = arith.constant 0 : index
    %c0_11 = arith.constant 0 : index
    %15 = vector.load %arg9[%c0_9, %c0_10, %c0_11] : memref<1x4x1xf32, #tpu.memory_space<vmem>>, vector<1x4x1xf32>
    %16 = vector.shape_cast %15 : vector<1x4x1xf32> to vector<4x1xf32>
    %c0_12 = arith.constant 0 : index
    %c0_13 = arith.constant 0 : index
    %c0_14 = arith.constant 0 : index
    %17 = vector.load %arg7[%c0_12, %c0_13, %c0_14] : memref<1x4x128xf32, #tpu.memory_space<vmem>>, vector<1x4x128xf32>
    %18 = vector.shape_cast %17 : vector<1x4x128xf32> to vector<4x128xf32>
    %c0_15 = arith.constant 0 : index
    %c0_16 = arith.constant 0 : index
    %c0_17 = arith.constant 0 : index
    %19 = vector.load %arg8[%c0_15, %c0_16, %c0_17] : memref<1x4x128xf32, #tpu.memory_space<vmem>>, vector<1x4x128xf32>
    %20 = vector.shape_cast %19 : vector<1x4x128xf32> to vector<4x128xf32>
    %21 = arith.subf %18, %20 : vector<4x128xf32>
    %22 = math.absf %21 : vector<4x128xf32>
    %23 = vector.broadcast %16 : vector<4x1xf32> to vector<4x128xf32>
    %24 = arith.mulf %23, %22 : vector<4x128xf32>
    %25 = vector.shape_cast %24 : vector<4x128xf32> to vector<1x4x128xf32>
    %cst_18 = arith.constant dense<0.000000e+00> : vector<1xf32>
    %26 = vector.multi_reduction <add>, %25, %cst_18 [1, 2] : vector<1x4x128xf32> to vector<1xf32>
    %27 = vector.shape_cast %26 : vector<1xf32> to vector<1x1x1xf32>
    %28 = vector.extract %27[0, 0, 0] : f32 from vector<1x1x1xf32>
    %29 = vector.broadcast %28 : f32 to vector<1x1x1xf32>
    %c0_19 = arith.constant 0 : index
    %c0_20 = arith.constant 0 : index
    %c0_21 = arith.constant 0 : index
    %30 = vector.load %arg11[%c0_19, %c0_20, %c0_21] : memref<1x1x1xf32, #tpu.memory_space<vmem>>, vector<1x1x1xf32>
    tpu.vector_store %arg11[%c0_19, %c0_20, %c0_21], %29 {strides = array<i32>} : memref<1x1x1xf32, #tpu.memory_space<vmem>>, vector<1x1x1xf32>,
    %c0_22 = arith.constant 0 : index
    %c0_23 = arith.constant 0 : index
    %c0_24 = arith.constant 0 : index
    %31 = vector.load %arg1[%c0_22, %c0_23, %c0_24] : memref<1x19x16xbf16, #tpu.memory_space<vmem>>, vector<1x19x16xbf16>
    %32 = vector.shape_cast %31 : vector<1x19x16xbf16> to vector<19x16xbf16>
    %33 = vector.extract_strided_slice %32 {offsets = [0, 0], sizes = [16, 16], strides = [1, 1]} : vector<19x16xbf16> to vector<16x16xbf16>
    %c0_25 = arith.constant 0 : index
    %c0_26 = arith.constant 0 : index
    %34 = vector.load %arg13[%c0_25, %c0_26] : memref<16x64xbf16, #tpu.memory_space<vmem>>, vector<16x16xbf16>
    tpu.vector_store %arg13[%c0_25, %c0_26], %33 {strides = array<i32>} : memref<16x64xbf16, #tpu.memory_space<vmem>>, vector<16x16xbf16>,
    %35 = vector.extract_strided_slice %32 {offsets = [1, 0], sizes = [16, 16], strides = [1, 1]} : vector<19x16xbf16> to vector<16x16xbf16>
    %c0_27 = arith.constant 0 : index
    %c16 = arith.constant 16 : index
    %36 = vector.load %arg13[%c0_27, %c16] : memref<16x64xbf16, #tpu.memory_space<vmem>>, vector<16x16xbf16>
    tpu.vector_store %arg13[%c0_27, %c16], %35 {strides = array<i32>} : memref<16x64xbf16, #tpu.memory_space<vmem>>, vector<16x16xbf16>,
    %37 = vector.extract_strided_slice %32 {offsets = [2, 0], sizes = [16, 16], strides = [1, 1]} : vector<19x16xbf16> to vector<16x16xbf16>
    %c0_28 = arith.constant 0 : index
    %c32 = arith.constant 32 : index
    %38 = vector.load %arg13[%c0_28, %c32] : memref<16x64xbf16, #tpu.memory_space<vmem>>, vector<16x16xbf16>
    tpu.vector_store %arg13[%c0_28, %c32], %37 {strides = array<i32>} : memref<16x64xbf16, #tpu.memory_space<vmem>>, vector<16x16xbf16>,
    %39 = vector.extract_strided_slice %32 {offsets = [3, 0], sizes = [16, 16], strides = [1, 1]} : vector<19x16xbf16> to vector<16x16xbf16>
    %c0_29 = arith.constant 0 : index
    %c48 = arith.constant 48 : index
    %40 = vector.load %arg13[%c0_29, %c48] : memref<16x64xbf16, #tpu.memory_space<vmem>>, vector<16x16xbf16>
    tpu.vector_store %arg13[%c0_29, %c48], %39 {strides = array<i32>} : memref<16x64xbf16, #tpu.memory_space<vmem>>, vector<16x16xbf16>,
    %c0_30 = arith.constant 0 : index
    %c0_31 = arith.constant 0 : index
    %41 = vector.load %arg13[%c0_30, %c0_31] : memref<16x64xbf16, #tpu.memory_space<vmem>>, vector<16x64xbf16>
    %c0_32 = arith.constant 0 : index
    %c0_33 = arith.constant 0 : index
    %42 = vector.load %arg2[%c0_32, %c0_33] : memref<64x256xbf16, #tpu.memory_space<vmem>>, vector<64x256xbf16>
    %cst_34 = arith.constant dense<0.000000e+00> : vector<16x256xf32>
    %43 = tpu.matmul %41, %42, %cst_34 {dimension_numbers = #tpu.dot_dimension_numbers<[1], [0], [0], [1], [0, 0, 1, 1], [], []>} : vector<16x64xbf16>, vector<64x256xbf16>, vector<16x256xf32> -> vector<16x256xf32>
    %44 = vector.extract_strided_slice %43 {offsets = [0, 0], sizes = [16, 128], strides = [1, 1]} : vector<16x256xf32> to vector<16x128xf32>
    %45 = vector.extract_strided_slice %43 {offsets = [0, 128], sizes = [16, 128], strides = [1, 1]} : vector<16x256xf32> to vector<16x128xf32>
    %46 = arith.mulf %44, %44 : vector<16x128xf32>
    %47 = arith.mulf %45, %45 : vector<16x128xf32>
    %48 = arith.addf %46, %47 : vector<16x128xf32>
    %49 = math.sqrt %48 : vector<16x128xf32>
    %c0_35 = arith.constant 0 : index
    %c0_36 = arith.constant 0 : index
    %50 = vector.load %arg3[%c0_35, %c0_36] : memref<128x8xf32, #tpu.memory_space<vmem>>, vector<128x8xf32>
    %cst_37 = arith.constant dense<0.000000e+00> : vector<16x8xf32>
    %51 = tpu.matmul %49, %50, %cst_37 {dimension_numbers = #tpu.dot_dimension_numbers<[1], [0], [0], [1], [0, 0, 1, 1], [], []>} : vector<16x128xf32>, vector<128x8xf32>, vector<16x8xf32> -> vector<16x8xf32>
    %cst_38 = arith.constant 9.99999974E-6 : f32
    %52 = vector.broadcast %cst_38 : f32 to vector<16x8xf32>
    %53 = arith.maximumf %51, %52 : vector<16x8xf32>
    %54 = math.log %53 : vector<16x8xf32>
    %c0_39 = arith.constant 0 : index
    %c0_40 = arith.constant 0 : index
    %c0_41 = arith.constant 0 : index
    %55 = vector.load %arg4[%c0_39, %c0_40, %c0_41] : memref<1x16x8xf32, #tpu.memory_space<vmem>>, vector<1x16x8xf32>
    %56 = vector.shape_cast %55 : vector<1x16x8xf32> to vector<16x8xf32>
    %57 = arith.subf %54, %56 : vector<16x8xf32>
    %58 = math.absf %57 : vector<16x8xf32>
    %59 = vector.shape_cast %58 : vector<16x8xf32> to vector<1x16x8xf32>
    %cst_42 = arith.constant dense<0.000000e+00> : vector<1xf32>
    %60 = vector.multi_reduction <add>, %59, %cst_42 [1, 2] : vector<1x16x8xf32> to vector<1xf32>
    %61 = vector.shape_cast %60 : vector<1xf32> to vector<1x1x1xf32>
    %62 = vector.extract %61[0, 0, 0] : f32 from vector<1x1x1xf32>
    %63 = vector.broadcast %62 : f32 to vector<1x1x1xf32>
    %c0_43 = arith.constant 0 : index
    %c0_44 = arith.constant 0 : index
    %c0_45 = arith.constant 0 : index
    %64 = vector.load %arg12[%c0_43, %c0_44, %c0_45] : memref<1x1x1xf32, #tpu.memory_space<vmem>>, vector<1x1x1xf32>
    tpu.vector_store %arg12[%c0_43, %c0_44, %c0_45], %63 {strides = array<i32>} : memref<1x1x1xf32, #tpu.memory_space<vmem>>, vector<1x1x1xf32>,
    return
  }
  func.func @transform_0(%arg0: i32) -> (i32, i32, i32) {
    %c0_i32 = arith.constant 0 : i32
    %c0_i32_0 = arith.constant 0 : i32
    %c0_i32_1 = arith.constant 0 : i32
    return %arg0, %c0_i32, %c0_i32_0 : i32, i32, i32
  }
  func.func @transform_1(%arg0: i32) -> (i32, i32) {
    %c0_i32 = arith.constant 0 : i32
    %c0_i32_0 = arith.constant 0 : i32
    %c0_i32_1 = arith.constant 0 : i32
    return %c0_i32, %c0_i32_0 : i32, i32
  }
  func.func @transform_2(%arg0: i32) -> (i32, i32) {
    %c0_i32 = arith.constant 0 : i32
    %c0_i32_0 = arith.constant 0 : i32
    %c0_i32_1 = arith.constant 0 : i32
    return %c0_i32, %c0_i32_0 : i32, i32
  }
  func.func @transform_3(%arg0: i32) -> (i32, i32, i32) {
    %c0_i32 = arith.constant 0 : i32
    %c0_i32_0 = arith.constant 0 : i32
    %c0_i32_1 = arith.constant 0 : i32
    return %arg0, %c0_i32, %c0_i32_0 : i32, i32, i32
  }
  func.func @transform_4(%arg0: i32) -> (i32, i32, i32) {
    %c0_i32 = arith.constant 0 : i32
    %c0_i32_0 = arith.constant 0 : i32
    %c0_i32_1 = arith.constant 0 : i32
    return %arg0, %c0_i32, %c0_i32_0 : i32, i32, i32
  }
  func.func @transform_5(%arg0: i32) -> (i32, i32, i32) {
    %c0_i32 = arith.constant 0 : i32
    %c0_i32_0 = arith.constant 0 : i32
    %c0_i32_1 = arith.constant 0 : i32
    return %arg0, %c0_i32, %c0_i32_0 : i32, i32, i32
  }
  func.func @transform_6(%arg0: i32) -> (i32, i32, i32) {
    %c0_i32 = arith.constant 0 : i32
    %c0_i32_0 = arith.constant 0 : i32
    %c0_i32_1 = arith.constant 0 : i32
    return %arg0, %c0_i32, %c0_i32_0 : i32, i32, i32
  }
  func.func @transform_7(%arg0: i32) -> (i32, i32, i32) {
    %c0_i32 = arith.constant 0 : i32
    %c0_i32_0 = arith.constant 0 : i32
    %c0_i32_1 = arith.constant 0 : i32
    return %arg0, %c0_i32, %c0_i32_0 : i32, i32, i32
  }
  func.func @transform_8(%arg0: i32) -> (i32, i32, i32) {
    %c0_i32 = arith.constant 0 : i32
    %c0_i32_0 = arith.constant 0 : i32
    %c0_i32_1 = arith.constant 0 : i32
    return %arg0, %c0_i32, %c0_i32_0 : i32, i32, i32
  }
  func.func @transform_9(%arg0: i32) -> (i32, i32, i32) {
    %c0_i32 = arith.constant 0 : i32
    %c0_i32_0 = arith.constant 0 : i32
    %c0_i32_1 = arith.constant 0 : i32
    return %arg0, %c0_i32, %c0_i32_0 : i32, i32, i32
  }
  func.func @transform_10(%arg0: i32) -> (i32, i32, i32) {
    %c0_i32 = arith.constant 0 : i32
    %c0_i32_0 = arith.constant 0 : i32
    %c0_i32_1 = arith.constant 0 : i32
    return %arg0, %c0_i32, %c0_i32_0 : i32, i32, i32
  }
  func.func @transform_11(%arg0: i32) -> (i32, i32, i32) {
    %c0_i32 = arith.constant 0 : i32
    %c0_i32_0 = arith.constant 0 : i32
    %c0_i32_1 = arith.constant 0 : i32
    return %arg0, %c0_i32, %c0_i32_0 : i32, i32, i32
  }
}

</mosaic_0001>

<bundles_post_ra>
// kernel: tpu_custom_call.1
= control target key start
LH: loop header
LB: loop body
LE: loop exit
PB: predicated region body
PF: predicated region fallthrough
CT: control target
= control target key end

     0   :  { %s1241_s17 = smov 0   ;;  %s1377_s0 = inlined_call_operand.vmem [shape: bf16[2,19,16], index: 0, kind: input, shape index: {}]   ;;  %s1378_s1 = inlined_call_operand.vmem [shape: bf16[64,256], index: 1, kind: input, shape index: {}]   ;;  %s1379_s2 = inlined_call_operand.vmem [shape: f32[128,8], index: 2, kind: input, shape index: {}]   ;;  %s1380_s3 = inlined_call_operand.vmem [shape: f32[2,16,8], index: 3, kind: input, shape index: {}]   ;;  %s1381_s4 = inlined_call_operand.vmem [shape: f32[2,2,128], index: 4, kind: input, shape index: {}]   ;;  %s1382_s5 = inlined_call_operand.vmem [shape: f32[2,2,1], index: 5, kind: input, shape index: {}]   ;;  %s1383_s6 = inlined_call_operand.vmem [shape: f32[2,4,128], index: 6, kind: input, shape index: {}]   ;;  %s1384_s7 = inlined_call_operand.vmem [shape: f32[2,4,128], index: 7, kind: input, shape index: {}]   ;;  %s1385_s8 = inlined_call_operand.vmem [shape: f32[2,4,1], index: 8, kind: input, shape index: {}]   ;;  %s1386_s9 = inlined_call_operand.vmem [shape: f32[2,1,1], index: 9, kind: output, shape index: {0}]   ;;  %s1387_s10 = inlined_call_operand.vmem [shape: f32[2,1,1], index: 10, kind: output, shape index: {1}]   ;;  %s1388_s11 = inlined_call_operand.vmem [shape: f32[2,1,1], index: 11, kind: output, shape index: {2}]  }
   0x1 LB: > { %s1013_s18 = sadd.s32 4294967295, %s1175_s17   ;;  %p1017_p0 = scmp.ge.s32.totalorder %s1175_s17, 1  ;;  %s1175_s17 = sphi %s1241_s17, %s22_s17  }
   0x2   : > { %p397_p1 = scmp.lt.s32.totalorder %s1175_s17, 3 }
   0x4   : > { %p398_p2 = pnand %p1017_p0, %p397_p1 }
   0x5   : > { %p466_p3 = scmp.lt.s32.totalorder (!%p398_p2), %s1013_s18, 1  ;;  %v1149_v0 = vld [vmem:[%s1378_s1 + $0x4] ss:$8 sps:$4 sm:$0xff] (!%p398_p2)   ;;  %v1151_v1 = vld [vmem:[%s1378_s1] ss:$8 sps:$4 sm:$0xff] (!%p398_p2)   ;;  %vm563_vm0 = vcmask (!%p398_p2), 130048  }
   0x6   : > { %401 = sbr.rel (%p398_p2) target bundleno = 828 (0x33c), region = 56  ;;  %v1152_v2 = vld [vmem:[%s1378_s1 + $0x14] ss:$8 sps:$4 sm:$0xff] (!%p398_p2)   ;;  %663 = vmatprep.subr.bf16.mxu0 (!%p398_p2), %v1149_v0  ;;  %v1154_v3 = vld [vmem:[%s1378_s1 + $0x10] ss:$8 sps:$4 sm:$0xff] (!%p398_p2)   ;;  %v1177_v17 = vmov (!%p398_p2), 0  }
   0x7   : > { %664 = vmatpush1.bf16.msra.mxu0 (!%p398_p2), %v1151_v1  ;;  %v1155_v6 = vld [vmem:[%s1378_s1 + $0x24] ss:$8 sps:$4 sm:$0xff] (!%p398_p2)   ;;  %v1157_v7 = vld [vmem:[%s1378_s1 + $0x20] ss:$8 sps:$4 sm:$0xff] (!%p398_p2)   ;;  %v1158_v11 = vld [vmem:[%s1378_s1 + $0x34] ss:$8 sps:$4 sm:$0xff] (!%p398_p2)   ;;  %695 = vmatprep.mubr.bf16.mxu0 (!%p398_p2), %v1177_v17 }
   0x8   : > { %665 = vmatprep.subr.bf16.mxu0 (!%p398_p2), %v1152_v2  ;;  %vm568_vm1 = vsmask.f32 (!%p398_p2), 7424  ;;  %1145 = vset.pattern.permute.xlu1 (!%p398_p2), %v1177_v17  ;;  %vm595_vm2 = vsmask.f32 (!%p398_p2), 6400  ;;  %v1160_v20 = vld [vmem:[%s1378_s1 + $0x30] ss:$8 sps:$4 sm:$0xff] (!%p398_p2)  }
   0x9   : > { %1146 = vset.pattern.permute.xlu0 (!%p398_p2), %v1177_v17  ;;  %vm586_vm3 = vcmask (!%p398_p2), 1046528   ;;  %s1178_s22 = smov (!%p398_p2), 16   ;;  %v726_v28 = vld [vmem:[%s1379_s2] sm:$0xff] (!%p398_p2)  ;;  %v727_v29 = vld [vmem:[%s1379_s2 + $0x8] sm:$0xff] (!%p398_p2)  ;;  %v728_v30 = vld [vmem:[%s1379_s2 + $0x10] sm:$0xff] (!%p398_p2)  ;;  %s1179_s29 = smov (!%p398_p2), 48  }
   0xa   : > { %v1094_v32 = vpack.c.bf16 (!%p398_p2), %v727_v29, %v726_v28  ;;  %v729_v33 = vld [vmem:[%s1379_s2 + $0x18] sm:$0xff] (!%p398_p2)  ;;  %v730_v35 = vld [vmem:[%s1379_s2 + $0x20] sm:$0xff] (!%p398_p2)  ;;  %v731_v36 = vld [vmem:[%s1379_s2 + $0x28] sm:$0xff] (!%p398_p2)  ;;  %s1180_s19 = smov (!%p398_p2), 32   ;;  %vm584_vm4 = vcmask (!%p398_p2), 261248   ;;  %vm593_vm5 = vcmask (!%p398_p2), 392448  }
   0xb   : > { %666 = vmatpush1.bf16.msra.mxu0 (!%p398_p2), %v1154_v3  ;;  %v1098_v34 = vpack.c.bf16 (!%p398_p2), %v729_v33, %v728_v30  ;;  %v1102_v37 = vpack.c.bf16 (!%p398_p2), %v731_v36, %v730_v35  ;;  %vm608_vm6 = vcmask (!%p398_p2), 523648   ;;  %vm659_vm7 = vcmask (!%p398_p2), 523264   ;;  %v732_v42 = vld [vmem:[%s1379_s2 + $0x30] sm:$0xff] (!%p398_p2)  ;;  %v733_v43 = vld [vmem:[%s1379_s2 + $0x38] sm:$0xff] (!%p398_p2)  ;;  %v734_v45 = vld [vmem:[%s1379_s2 + $0x40] sm:$0xff] (!%p398_p2) }
   0xc   : > { %667 = vmatprep.subr.bf16.mxu0 (!%p398_p2), %v1155_v6  ;;  %1095 = vmatprep.subr.bf16.mxu1 (!%p398_p2), %v1094_v32  ;;  %v1106_v44 = vpack.c.bf16 (!%p398_p2), %v733_v43, %v732_v42  ;;  %v735_v46 = vld [vmem:[%s1379_s2 + $0x48] sm:$0xff] (!%p398_p2)  ;;  %v736_v48 = vld [vmem:[%s1379_s2 + $0x50] sm:$0xff] (!%p398_p2)  ;;  %v737_v49 = vld [vmem:[%s1379_s2 + $0x58] sm:$0xff] (!%p398_p2)  ;;  %vm516_vm12 = vcmask (!%p398_p2), 1041408   ;;  %vm541_vm13 = vcmask (!%p398_p2), 1043456   ;;  %vm829_vm14 = vcmask (!%p398_p2), 64512  }
   0xd   : > { %s1390_s18 = smov (!%p466_p3, %s1013_s18), 1  ;;  %1097 = vmatpush3.bf16.msra.mxu1 %v1094_v32  ;;  %v1110_v47 = vpack.c.bf16 %v735_v46, %v734_v45  ;;  %v738_v50 = vld [vmem:[%s1379_s2 + $0x60] sm:$0xff]  ;;  %v1114_v51 = vpack.c.bf16 %v737_v49, %v736_v48  ;;  %v739_v52 = vld [vmem:[%s1379_s2 + $0x68] sm:$0xff]  ;;  %v740_v54 = vld [vmem:[%s1379_s2 + $0x70] sm:$0xff]  ;;  %vm528_vm15 = vcmask 0  }
   0xe   : > { %s1126_s25 = smul.u32 12, %s1390_s18  ;;  %1099 = vmatprep.subr.bf16.mxu1 %v1098_v34  ;;  %v1118_v53 = vpack.c.bf16 %v739_v52, %v738_v50  ;;  %v741_v55 = vld [vmem:[%s1379_s2 + $0x78] sm:$0xff]  ;;  %s1021_s23 = sshll.u32 %s1390_s18, 1 }
   0xf   : > { %668 = vmatpush1.bf16.msra.mxu0 %v1157_v7  ;;  %v1122_v56 = vpack.c.bf16 %v741_v55, %v740_v54  ;;  %s1331_s24 = sshll.u32 %s1390_s18, 2  ;;  %s483_s27 = scalar_lea.vmem %s1382_s5, %s1021_s23 }
  0x10   : > { %s470_s30 = scalar_lea.vmem %s1377_s0, %s1126_s25  ;;  %669 = vmatprep.subr.bf16.mxu0 %v1158_v11  ;;  %v508_v57 = vld [vmem:[%s483_s27] sm:$0x3]  ;;  %s479_s14 = scalar_lea.vmem %s1381_s4, %s1021_s23 }
  0x11   : > { %v1147_v4 = vld [vmem:[%s470_s30] sm:$0xff]   ;;  %v1148_v5 = vld [vmem:[%s470_s30 + $0x8] ss:$0 sps:$4 sm:$0x33]   ;;  %1101 = vmatpush3.bf16.msra.mxu1 %v1098_v34  ;;  %s495_s30 = scalar_lea.vmem %s1385_s8, %s1331_s24  ;;  %s1040_s23 = sshll.u32 %s1390_s18, 4 }
  0x12   : > { %v570_v8 = vshrl.u32 %v1147_v4, 16  ;;  %v572_v9 = vshll.u32 %v1147_v4, 16  ;;  %v577_v10 = vshll.u32 %v1148_v5, 16  ;;  %564 = vst.msk [vmem:[#allocation2] sm:$0xff] %vm563_vm0, %v1147_v4  ;;  %v599_v12 = vshrl.u32 %v1148_v5, 16  ;;  %1103 = vmatprep.subr.bf16.mxu1 %v1102_v37  ;;  %s475_s26 = scalar_lea.vmem %s1380_s3, %s1040_s23  ;;  %s504_s20 = scalar_lea.vmem %s1388_s11, %s1390_s18 }
  0x13   : > { %v587_v22 = vrot.slane %v1147_v4, 1  ;;  %v588_v23 = vrot.slane %v1148_v5, 1  ;;  %670 = vmatpush1.bf16.msra.mxu0 %v1160_v20  ;;  %v530_v58 = vld [vmem:[%s495_s30] sm:$0xf]  ;;  %v824_v33 = vld [vmem:[%s475_s26 + $0x8] sm:$0xff] }
  0x14   : > { %v574_v13 = vrot.slane %v572_v9, 1  ;;  %v579_v14 = vrot.slane %v577_v10, 1  ;;  %v596_v15 = vrot.slane %v570_v8, 1  ;;  %v597_v16 = vrot.slane %v572_v9, 2  ;;  %v823_v36 = vld [vmem:[%s475_s26] sm:$0xff] }
  0x15   : > { %v601_v18 = vrot.slane %v599_v12, 1  ;;  %v602_v19 = vrot.slane %v577_v10, 2  ;;  %v589_v31 = vsel %vm586_vm3, %v587_v22, %v588_v23  ;;  %1105 = vmatpush3.bf16.msra.mxu1 %v1102_v37 }
  0x16   : > { %v575_v21 = vor.u32 %v574_v13, %v570_v8  ;;  %v598_v24 = vor.u32 %v597_v16, %v596_v15  ;;  %1107 = vmatprep.subr.bf16.mxu1 %v1106_v44  ;;  %v506_v15 = vld [vmem:[%s479_s14] sm:$0x3]  ;;  %s501_s14 = scalar_lea.vmem %s1387_s10, %s1390_s18 }
  0x17   : > { %v603_v25 = vor.u32 %v602_v19, %v601_v18  ;;  %v1026_v16 = vadd.f32 -1.0, %v506_v15 }
  0x18   : > { %v580_v26 = vsel %vm568_vm1, %v575_v21, %v579_v14 }
  0x19   : > { %581 = vrot.lane.b32.xlu0 %v580_v26, %s1178_s22  ;;  %v604_v27 = vsel %vm595_vm2, %v598_v24, %v603_v25  ;;  %1109 = vmatpush3.bf16.msra.mxu1 %v1106_v44  ;;  %s491_s22 = scalar_lea.vmem %s1384_s7, %s1331_s24 }
  0x1a   : > { %605 = vrot.lane.b32.xlu1 %v604_v27, %s1179_s29  ;;  %1111 = vmatprep.subr.bf16.mxu1 %v1110_v47  ;;  %v532_v20 = vld [vmem:[%s491_s22] sm:$0xf]  ;;  %s498_s29 = scalar_lea.vmem %s1386_s9, %s1390_s18 }
  0x1d   : > { %590 = vrot.lane.b32.xlu0 %v589_v31, %s1180_s19  ;;  %1113 = vmatpush3.bf16.msra.mxu1 %v1110_v47  ;;  %s487_s19 = scalar_lea.vmem %s1383_s6, %s1331_s24 }
  0x1e   : > { %1115 = vmatprep.subr.bf16.mxu1 %v1114_v51  ;;  %511 = vperm.xlu1 %1145, %v508_v57   ;;  %v531_v19 = vld [vmem:[%s487_s19] sm:$0xf] }
  0x1f   : > { %v533_v22 = vsub.f32 %v531_v19, %v532_v20 }
  0x21   : > { %1117 = vmatpush3.bf16.msra.mxu1 %v1114_v51  ;;  %537 = vperm.xlu0 %1146, %v530_v58   ;;  %v534_v24 = vand.u32 2147483647, %v533_v22 }
  0x22   : > { %1119 = vmatprep.subr.bf16.mxu1 %v1118_v53 }
  0x25   : > { %1121 = vmatpush3.bf16.msra.mxu1 %v1118_v53 }
  0x26   : > { %1123 = vmatprep.subr.bf16.mxu1 %v1122_v56 }
  0x29   : > { %1125 = vmatpush3.bf16.msra.mxu1 %v1122_v56 }
  0x8b   : > { %v582_v38 = vpop.permute.xlu0 %581 }
  0x8c   : > { %585 = vst.msk [vmem:[#allocation2] sm:$0xff] %vm584_vm4, %v582_v38  ;;  %v606_v39 = vpop.permute.xlu1 %605 }
  0x8f   : > { %v591_v40 = vpop.permute.xlu0 %590 }
  0x90   : > { %594 = vst.msk [vmem:[#allocation2] sm:$0xff] %vm593_vm5, %v591_v40 }
  0x91   : > { %609 = vst.msk [vmem:[#allocation2] sm:$0xff] %vm608_vm6, %v606_v39 }
  0x98   : > { %v610_v41 = vld [vmem:[#allocation2] sm:$0xff] }
  0x99   : > { %1037 = vmatmul.mubr.msk.bf16.vlgmr.msra.gmra.mrb[0].mxu0 %vm659_vm7, %v610_v41 }
  0x9d   : > { %v512_v17 = vpop.permute.xlu1 %511 }
  0x9e   : > { %v514_v18 = vmul.f32 %v1026_v16, %v512_v17 }
  0xa0   : > { %v515_v21 = vmul.f32 %v1026_v16, %v514_v18  ;;  %v538_v25 = vpop.permute.xlu0 %537 }
  0xa1   : > { %v540_v26 = vmul.f32 %v538_v25, %v534_v24 }
  0xa2   : > { %v517_v23 = vsel %vm516_vm12, %v515_v21, 0.0 }
  0xa3   : > { %518 = vadd.xlane.f32.xlu1 %v517_v23  ;;  %v542_v27 = vsel %vm541_vm13, %v540_v26, 0.0 }
  0xa4   : > { %543 = vadd.xlane.f32.xlu0 %v542_v27 }
 0x130   : > { %v519_v45 = vpop.xlane.xlu1 %518 }
 0x131   : > { %v520_v46 = vrot.slane %v519_v45, 4  ;;  %v544_v48 = vpop.xlane.xlu0 %543 }
 0x132   : > { %v545_v50 = vrot.slane %v544_v48, 4 }
 0x133   : > { %v521_v47 = vadd.f32 %v520_v46, %v519_v45 }
 0x134   : > { %v546_v51 = vadd.f32 %v545_v50, %v544_v48 }
 0x135   : > { %v522_v49 = vrot.slane %v521_v47, 2 }
 0x136   : > { %v547_v53 = vrot.slane %v546_v51, 2 }
 0x137   : > { %v523_v52 = vadd.f32 %v522_v49, %v521_v47 }
 0x138   : > { %v548_v55 = vadd.f32 %v547_v53, %v546_v51 }
 0x139   : > { %v524_v54 = vrot.slane %v523_v52, 1 }
 0x13a   : > { %v549_v57 = vrot.slane %v548_v55, 1 }
 0x13b   : > { %v525_v56 = vadd.f32 %v524_v54, %v523_v52 }
 0x13c   : > { %v550_v58 = vadd.f32 %v549_v57, %v548_v55 }
 0x13d   : > { %1127 = vpush %v525_v56 }
 0x13e   : > { %1129 = vpush %v550_v58 }
 0x16c   : > { %v697_v59 = vpop.f32.mrb[0].mxu0 }
 0x16d   : > { %v706_v60 = vmul.f32 %v697_v59, %v697_v59  ;;  %v699_v61 = vpop.f32.mrb[1].mxu0 }
 0x16e   : > { %v708_v62 = vmul.f32 %v699_v61, %v699_v61  ;;  %v701_v63 = vpop.f32.mrb[2].mxu0  ;;  %s1128_s30 = spop %1127 }
 0x16f   : > { %v707_v0 = vmul.f32 %v701_v63, %v701_v63  ;;  %v703_v1 = vpop.f32.mrb[3].mxu0  ;;  %v527_v59 = vstv %s1128_s30  ;;  %s1130_s15 = spop %1129 }
 0x170   : > { %v710_v2 = vadd.f32 %v708_v62, %v706_v60  ;;  %v709_v3 = vmul.f32 %v703_v1, %v703_v1  ;;  %529 = vst.msk [vmem:[%s498_s29] sm:$0x1] %vm528_vm15, %v527_v59  ;;  %v552_v60 = vstv %s1130_s15 }
 0x171   : > { %553 = vst.msk [vmem:[%s501_s14] sm:$0x1] %vm528_vm15, %v552_v60 }
 0x172   : > { %v711_v4 = vadd.f32 %v709_v3, %v707_v0  ;;  %1161 = vrsqrt.f32 %v710_v2  ;;  %vm714_vm8 = vcmp.eq.f32.partialorder %v710_v2, inf  ;;  %v717_v8 = vand.u32 2147483648, %v710_v2 }
 0x173   : > { %vm716_vm9 = vcmp.eq.f32.partialorder %v710_v2, 0.0 }
 0x174   : > { %1163 = vrsqrt.f32 %v711_v4  ;;  %vm721_vm10 = vcmp.eq.f32.partialorder %v711_v4, inf  ;;  %v724_v12 = vand.u32 2147483648, %v711_v4  ;;  %vm723_vm11 = vcmp.eq.f32.partialorder %v711_v4, 0.0 }
 0x17c   : > { %v1162_v5 = vpop.eup %1161 }
 0x17d   : > { %v713_v6 = vmul.f32 %v1162_v5, %v710_v2 }
 0x17e   : > { %v1164_v7 = vpop.eup %1163 }
 0x17f   : > { %v715_v9 = vsel %vm714_vm8, %v710_v2, %v713_v6  ;;  %v720_v10 = vmul.f32 %v1164_v7, %v711_v4 }
 0x180   : > { %v718_v11 = vsel %vm716_vm9, %v717_v8, %v715_v9 }
 0x181   : > { %1091 = vmatprep.mubr.f32.mxu1 %v718_v11  ;;  %v722_v13 = vsel %vm721_vm10, %v711_v4, %v720_v10 }
 0x182   : > { %v725_v14 = vsel %vm723_vm11, %v724_v12, %v722_v13 }
 0x183   : > { %1092 = vmatmul.mubr.f32.vlgmr.msra.gmra.mrb[0].mxu1 %v725_v14 }
 0x256   : > { %v1093_v28 = vpop.f32.mrb[0].mxu1 }
 0x257   : > { %v818_v29 = vmax.f32 %v1093_v28, 1e-05  ;;  %v808_v30 = vpop.f32.mrb[1].mxu1 }
 0x258   : > { %v817_v31 = vmax.f32 %v808_v30, 1e-05 }
 0x259   : > { %1165 = vlog2.f32 %v818_v29 }
 0x25a   : > { %1167 = vlog2.f32 %v817_v31 }
 0x263   : > { %v1166_v32 = vpop.eup %1165 }
 0x264   : > { %v1168_v34 = vpop.eup %1167  ;;  %v822_v35 = vmul.f32 0.6931472, %v1166_v32 }
 0x265   : > { %v820_v37 = vmul.f32 0.6931472, %v1168_v34 }
 0x266   : > { %v826_v38 = vsub.f32 %v822_v35, %v824_v33 }
 0x267   : > { %v825_v39 = vsub.f32 %v820_v37, %v823_v36 }
 0x268   : > { %v828_v40 = vand.u32 2147483647, %v826_v38 }
 0x269   : > { %v827_v41 = vand.u32 2147483647, %v825_v39 }
 0x26a   : > { %v831_v42 = vsel %vm829_vm14, %v828_v40, 0.0 }
 0x26b   : > { %v830_v43 = vsel %vm829_vm14, %v827_v41, 0.0 }
 0x26c   : > { %v832_v44 = vadd.f32 %v831_v42, %v830_v43 }
 0x26e   : > { %833 = vadd.xlane.f32.xlu1 %v832_v44 }
 0x2fb   : > { %v834_v61 = vpop.xlane.xlu1 %833 }
 0x2fc   : > { %v835_v62 = vrot.slane %v834_v61, 4 }
 0x2fe   : > { %v836_v63 = vadd.f32 %v835_v62, %v834_v61 }
 0x300   : > { %v837_v0 = vrot.slane %v836_v63, 2 }
 0x302   : > { %v838_v1 = vadd.f32 %v837_v0, %v836_v63 }
 0x304   : > { %v839_v2 = vrot.slane %v838_v1, 1 }
 0x306   : > { %v840_v3 = vadd.f32 %v839_v2, %v838_v1 }
 0x308   : > { %1131 = vpush %v840_v3 }
 0x339   : > { %s1132_s21 = spop %1131 }
 0x33a   : > { %v842_v4 = vstv %s1132_s21 }
 0x33b   : > { %843 = vst.msk [vmem:[%s504_s20] sm:$0x1] %vm528_vm15, %v842_v4 }
 0x33c PF: > { %s22_s17 = sadd.s32 1, %s1175_s17  }
 0x33d   : > { %p19_p4 = scmp.ge.s32.totalorder %s22_s17, 4  }
 0x33f   :  { %21 = sbr.rel (!%p19_p4) target bundleno = 1 (0x1), region = 128 }

</bundles_post_ra>
